<compile_context>
chip_gen: v7x
topology: tpu7x:2x2x1
jax: 0.10.0
libtpu: 0.0.40
codegen_flags: <defaults>
</compile_context>

<pallas_src>
import functools

import jax
import jax.numpy as jnp
from jax.experimental import pallas as pl
from jax.experimental.pallas import tpu as pltpu

GAMMA, ZETA = -0.1, 1.1        # hard-concrete stretch limits
EPS = 1e-6


# ------------------------------ fused kernel --------------------------------


def _l0mlp_fused_kernel(x_ref, *refs, dims):
    """Fused dual-path MLP.

    refs = [w1, p1, w2, p2, ..., wL, pL, out]
      w_l : (Din_l, Dout_l) bf16 weight
      p_l : (1, 2*Din_l + Dout_l) f32 packed [z_det | z_rnd | bias]
    dims : (D0, D1, ..., DL) with DL already lane-padded.
    """
    o_ref = refs[-1]
    layer_refs = refs[:-1]
    num_layers = len(dims) - 1

    h_det = x_ref[...]            # (TB, D0) f32, VMEM-resident
    h_rnd = h_det                 # first layer: input_random is None -> reuse input
    tb = h_det.shape[0]

    for li in range(num_layers):
        w_ref, p_ref = layer_refs[2 * li], layer_refs[2 * li + 1]
        din, dout = dims[li], dims[li + 1]
        zd = p_ref[:, 0:din]                      # (1, Din) f32
        zr = p_ref[:, din:2 * din]                # (1, Din) f32
        b = p_ref[:, 2 * din:2 * din + dout]      # (1, Dout) f32

        if li == num_layers - 1:
            # Final layer + final sum, using linearity:
            #   (h_det*zd)@W + b + (h_rnd*zr)@W + b == (h_det*zd + h_rnd*zr)@W + 2b
            hh = (h_det * zd + h_rnd * zr).astype(jnp.bfloat16)
            out = jnp.dot(hh, w_ref[...], preferred_element_type=jnp.float32) + 2.0 * b
            o_ref[...] = out.astype(o_ref.dtype)
        else:
            # Stack both paths along M: one MXU matmul per layer, W pushed once.
            hh = jnp.concatenate([h_det * zd, h_rnd * zr], axis=0).astype(jnp.bfloat16)
            y = jnp.dot(hh, w_ref[...], preferred_element_type=jnp.float32) + b
            h_det = y[:tb]
            h_rnd = y[tb:]


def l0mlp_forward(x, weights, packed_params, dims, out_dim_padded, *, block_b=None):
    """x: (B, D0) f32.  weights: list of bf16 (Din, Dout).  packed_params: list of
    f32 (1, 2*Din+Dout) [z_det | z_rnd | bias].  dims: layer widths (last one padded)."""
    B, D0 = x.shape
    if block_b is None:
        block_b = B               # single grid step by default (single-TC friendly)
    assert B % block_b == 0, (B, block_b)
    grid = (B // block_b,)

    in_specs = [pl.BlockSpec((block_b, D0), lambda i: (i, 0))]
    inputs = [x]
    for w, p in zip(weights, packed_params):
        in_specs += [
            pl.BlockSpec(w.shape, lambda i: (0, 0)),   # bf16 weight (full block)
            pl.BlockSpec(p.shape, lambda i: (0, 0)),   # packed [zd | zr | b] (full block)
        ]
        inputs += [w, p]

    kernel = functools.partial(_l0mlp_fused_kernel, dims=tuple(dims))
    return pl.pallas_call(
        kernel,
        out_shape=jax.ShapeDtypeStruct((B, out_dim_padded), jnp.float32),
        grid=grid,
        in_specs=in_specs,
        out_specs=pl.BlockSpec((block_b, out_dim_padded), lambda i: (i, 0)),
        compiler_params=pltpu.CompilerParams(dimension_semantics=("parallel",)),
    )(*inputs)


# ------------------------------ model wrapper --------------------------------


class L0MLPPallas:
    """Pallas port of L0MLP.forward (eval-mode gates; random-path gates sampled host-side)."""

    def __init__(self, input_dim, num_classes, layer_dims=(256, 128),
                 temperature=2.0 / 3.0, key=None, lane_pad=128):
        self.input_dim = input_dim
        self.num_classes = num_classes
        self.layer_dims = tuple(layer_dims)
        self.temperature = temperature
        dims = [input_dim] + list(layer_dims) + [num_classes]
        # pad final output dim to a lane-dense multiple of 128
        self.out_dim_padded = max(((num_classes + lane_pad - 1) // lane_pad) * lane_pad,
                                  lane_pad)
        self.dims_padded = dims[:-1] + [self.out_dim_padded]

        keys = jax.random.split(key, 3 * (len(dims) - 1))
        self.weights = []    # bf16, last layer lane-padded
        self.biases = []     # f32, last layer lane-padded
        self.z_dets = []     # f32 eval-mode deterministic gates (folded host-side)
        self.qz_logas = []
        for i in range(len(dims) - 1):
            din, dout = dims[i], dims[i + 1]
            kw, kb, kq = keys[3 * i: 3 * i + 3]
            w = jax.random.normal(kw, (din, dout), jnp.float32) * jnp.sqrt(2.0 / din)
            b = jax.random.normal(kb, (dout,), jnp.float32) * 0.1
            droprate_init = 0.2 if i == 0 else 0.5
            qz_loga = (jnp.log(1.0 - droprate_init) - jnp.log(droprate_init)
                       + 0.01 * jax.random.normal(kq, (din,), jnp.float32))
            if i == len(dims) - 2 and dout < self.out_dim_padded:
                pad = self.out_dim_padded - dout
                w = jnp.pad(w, ((0, 0), (0, pad)))
                b = jnp.pad(b, (0, pad))
            z_det = jnp.clip(jax.nn.sigmoid(qz_loga) * (ZETA - GAMMA) + GAMMA, 0.0, 1.0)
            self.weights.append(w.astype(jnp.bfloat16))   # stream bf16 to the MXU
            self.biases.append(b)
            self.z_dets.append(z_det)
            self.qz_logas.append(qz_loga)

    def sample_random_gates(self, key):
        """Hard-concrete gate samples for the `input_random` path (host-side glue)."""
        zs = []
        for qz_loga, k in zip(self.qz_logas, jax.random.split(key, len(self.qz_logas))):
            u = jax.random.uniform(k, qz_loga.shape, jnp.float32, EPS, 1.0 - EPS)
            s = jax.nn.sigmoid((jnp.log(u) - jnp.log(1.0 - u) + qz_loga) / self.temperature)
            zs.append(jnp.clip(s * (ZETA - GAMMA) + GAMMA, 0.0, 1.0))
        return zs

    def _pack_params(self, z_rnds):
        """Per layer: one (1, 2*Din+Dout) f32 vector [z_det | z_rnd | bias]."""
        packed = []
        for zd, zr, b in zip(self.z_dets, z_rnds, self.biases):
            packed.append(jnp.concatenate([zd, zr, b]).reshape(1, -1).astype(jnp.float32))
        return packed

    def __call__(self, x, z_rnds, block_b=None):
        y = l0mlp_forward(x.astype(jnp.float32), self.weights, self._pack_params(z_rnds),
                          self.dims_padded, self.out_dim_padded, block_b=block_b)
        return y[:, :self.num_classes]


# -------------------------------- reference ----------------------------------


def reference_forward(model, x, z_rnds):
    """Pure-JAX reference with matching numerics (bf16 MXU operands, f32 accumulate,
    last-layer sum-before-matmul)."""
    h_det = x.astype(jnp.float32)
    h_rnd = h_det
    n = len(model.weights)
    for li, (w, b, zd, zr) in enumerate(zip(model.weights, model.biases,
                                            model.z_dets, z_rnds)):
        if li == n - 1:
            hh = (h_det * zd[None, :] + h_rnd * zr[None, :]).astype(jnp.bfloat16)
            out = jnp.dot(hh, w, preferred_element_type=jnp.float32) + 2.0 * b[None, :]
            return out[:, :model.num_classes]
        h_det = jnp.dot((h_det * zd[None, :]).astype(jnp.bfloat16), w,
                        preferred_element_type=jnp.float32) + b[None, :]
        h_rnd = jnp.dot((h_rnd * zr[None, :]).astype(jnp.bfloat16), w,
                        preferred_element_type=jnp.float32) + b[None, :]


# ----------------------------------- main -------------------------------------


if __name__ == "__main__":
    key = jax.random.PRNGKey(0)
    k_param, k_x, k_gate = jax.random.split(key, 3)

    B, input_dim, num_classes = 128, 128, 10
    layer_dims = (256, 128)

    model = L0MLPPallas(input_dim, num_classes, layer_dims, key=k_param)
    x = jax.random.normal(k_x, (B, input_dim), jnp.float32)
    z_rnds = model.sample_random_gates(k_gate)

    y = model(x, z_rnds)
    y = jax.block_until_ready(y)
    assert y.shape == (B, num_classes), y.shape

    y_ref = reference_forward(model, x, z_rnds)
    max_err = float(jnp.max(jnp.abs(y - y_ref)))
    assert jnp.allclose(y, y_ref, atol=1e-2, rtol=1e-2), f"max abs err {max_err}"

    print("KERNEL_OK")
</pallas_src>

<mosaic_0001>
module attributes {stable_mosaic.version = 11 : i64} {
  func.func @_l0mlp_fused_kernel(%arg0: i32, %arg1: memref<128x128xf32, #tpu.memory_space<vmem>>, %arg2: memref<128x256xbf16, #tpu.memory_space<vmem>>, %arg3: memref<1x512xf32, #tpu.memory_space<vmem>>, %arg4: memref<256x128xbf16, #tpu.memory_space<vmem>>, %arg5: memref<1x640xf32, #tpu.memory_space<vmem>>, %arg6: memref<128x128xbf16, #tpu.memory_space<vmem>>, %arg7: memref<1x384xf32, #tpu.memory_space<vmem>>, %arg8: memref<128x128xf32, #tpu.memory_space<vmem>>) attributes {dimension_semantics = [#tpu.dimension_semantics<parallel>], iteration_bounds = array<i64: 1>, scalar_prefetch = 0 : i64, scratch_operands = 0 : i64, tpu.core_type = #tpu.core_type<tc>, window_params = [{transform_indices = @transform_0, window_bounds = array<i64: 128, 128>}, {pipeline_mode = #tpu.pipeline_mode<synchronous>, transform_indices = @transform_1, window_bounds = array<i64: 128, 256>}, {pipeline_mode = #tpu.pipeline_mode<synchronous>, transform_indices = @transform_2, window_bounds = array<i64: 1, 512>}, {pipeline_mode = #tpu.pipeline_mode<synchronous>, transform_indices = @transform_3, window_bounds = array<i64: 256, 128>}, {pipeline_mode = #tpu.pipeline_mode<synchronous>, transform_indices = @transform_4, window_bounds = array<i64: 1, 640>}, {pipeline_mode = #tpu.pipeline_mode<synchronous>, transform_indices = @transform_5, window_bounds = array<i64: 128, 128>}, {pipeline_mode = #tpu.pipeline_mode<synchronous>, transform_indices = @transform_6, window_bounds = array<i64: 1, 384>}, {transform_indices = @transform_7, window_bounds = array<i64: 128, 128>}]} {
    %c0 = arith.constant 0 : index
    %c0_0 = arith.constant 0 : index
    %0 = vector.load %arg1[%c0, %c0_0] : memref<128x128xf32, #tpu.memory_space<vmem>>, vector<128x128xf32>
    %c0_1 = arith.constant 0 : index
    %c0_2 = arith.constant 0 : index
    %1 = vector.load %arg3[%c0_1, %c0_2] : memref<1x512xf32, #tpu.memory_space<vmem>>, vector<1x128xf32>
    %c0_3 = arith.constant 0 : index
    %c128 = arith.constant 128 : index
    %2 = vector.load %arg3[%c0_3, %c128] : memref<1x512xf32, #tpu.memory_space<vmem>>, vector<1x128xf32>
    %c0_4 = arith.constant 0 : index
    %c256 = arith.constant 256 : index
    %3 = vector.load %arg3[%c0_4, %c256] : memref<1x512xf32, #tpu.memory_space<vmem>>, vector<1x256xf32>
    %4 = vector.broadcast %1 : vector<1x128xf32> to vector<128x128xf32>
    %5 = arith.mulf %0, %4 : vector<128x128xf32>
    %6 = vector.broadcast %2 : vector<1x128xf32> to vector<128x128xf32>
    %7 = arith.mulf %0, %6 : vector<128x128xf32>
    %8 = tpu.concatenate %5, %7 in 0 : vector<128x128xf32>, vector<128x128xf32> -> vector<256x128xf32>
    %9 = arith.truncf %8 : vector<256x128xf32> to vector<256x128xbf16>
    %c0_5 = arith.constant 0 : index
    %c0_6 = arith.constant 0 : index
    %10 = vector.load %arg2[%c0_5, %c0_6] : memref<128x256xbf16, #tpu.memory_space<vmem>>, vector<128x256xbf16>
    %cst = arith.constant dense<0.000000e+00> : vector<256x256xf32>
    %11 = tpu.matmul %9, %10, %cst {dimension_numbers = #tpu.dot_dimension_numbers<[1], [0], [0], [1], [0, 0, 1, 1], [], []>} : vector<256x128xbf16>, vector<128x256xbf16>, vector<256x256xf32> -> vector<256x256xf32>
    %12 = vector.broadcast %3 : vector<1x256xf32> to vector<256x256xf32>
    %13 = arith.addf %11, %12 : vector<256x256xf32>
    %14 = vector.extract_strided_slice %13 {offsets = [0, 0], sizes = [128, 256], strides = [1, 1]} : vector<256x256xf32> to vector<128x256xf32>
    %15 = vector.extract_strided_slice %13 {offsets = [128, 0], sizes = [128, 256], strides = [1, 1]} : vector<256x256xf32> to vector<128x256xf32>
    %c0_7 = arith.constant 0 : index
    %c0_8 = arith.constant 0 : index
    %16 = vector.load %arg5[%c0_7, %c0_8] : memref<1x640xf32, #tpu.memory_space<vmem>>, vector<1x256xf32>
    %c0_9 = arith.constant 0 : index
    %c256_10 = arith.constant 256 : index
    %17 = vector.load %arg5[%c0_9, %c256_10] : memref<1x640xf32, #tpu.memory_space<vmem>>, vector<1x256xf32>
    %c0_11 = arith.constant 0 : index
    %c512 = arith.constant 512 : index
    %18 = vector.load %arg5[%c0_11, %c512] : memref<1x640xf32, #tpu.memory_space<vmem>>, vector<1x128xf32>
    %19 = vector.broadcast %16 : vector<1x256xf32> to vector<128x256xf32>
    %20 = arith.mulf %14, %19 : vector<128x256xf32>
    %21 = vector.broadcast %17 : vector<1x256xf32> to vector<128x256xf32>
    %22 = arith.mulf %15, %21 : vector<128x256xf32>
    %23 = tpu.concatenate %20, %22 in 0 : vector<128x256xf32>, vector<128x256xf32> -> vector<256x256xf32>
    %24 = arith.truncf %23 : vector<256x256xf32> to vector<256x256xbf16>
    %c0_12 = arith.constant 0 : index
    %c0_13 = arith.constant 0 : index
    %25 = vector.load %arg4[%c0_12, %c0_13] : memref<256x128xbf16, #tpu.memory_space<vmem>>, vector<256x128xbf16>
    %cst_14 = arith.constant dense<0.000000e+00> : vector<256x128xf32>
    %26 = tpu.matmul %24, %25, %cst_14 {dimension_numbers = #tpu.dot_dimension_numbers<[1], [0], [0], [1], [0, 0, 1, 1], [], []>} : vector<256x256xbf16>, vector<256x128xbf16>, vector<256x128xf32> -> vector<256x128xf32>
    %27 = vector.broadcast %18 : vector<1x128xf32> to vector<256x128xf32>
    %28 = arith.addf %26, %27 : vector<256x128xf32>
    %29 = vector.extract_strided_slice %28 {offsets = [0, 0], sizes = [128, 128], strides = [1, 1]} : vector<256x128xf32> to vector<128x128xf32>
    %30 = vector.extract_strided_slice %28 {offsets = [128, 0], sizes = [128, 128], strides = [1, 1]} : vector<256x128xf32> to vector<128x128xf32>
    %c0_15 = arith.constant 0 : index
    %c0_16 = arith.constant 0 : index
    %31 = vector.load %arg7[%c0_15, %c0_16] : memref<1x384xf32, #tpu.memory_space<vmem>>, vector<1x128xf32>
    %c0_17 = arith.constant 0 : index
    %c128_18 = arith.constant 128 : index
    %32 = vector.load %arg7[%c0_17, %c128_18] : memref<1x384xf32, #tpu.memory_space<vmem>>, vector<1x128xf32>
    %c0_19 = arith.constant 0 : index
    %c256_20 = arith.constant 256 : index
    %33 = vector.load %arg7[%c0_19, %c256_20] : memref<1x384xf32, #tpu.memory_space<vmem>>, vector<1x128xf32>
    %34 = vector.broadcast %31 : vector<1x128xf32> to vector<128x128xf32>
    %35 = arith.mulf %29, %34 : vector<128x128xf32>
    %36 = vector.broadcast %32 : vector<1x128xf32> to vector<128x128xf32>
    %37 = arith.mulf %30, %36 : vector<128x128xf32>
    %38 = arith.addf %35, %37 : vector<128x128xf32>
    %39 = arith.truncf %38 : vector<128x128xf32> to vector<128x128xbf16>
    %c0_21 = arith.constant 0 : index
    %c0_22 = arith.constant 0 : index
    %40 = vector.load %arg6[%c0_21, %c0_22] : memref<128x128xbf16, #tpu.memory_space<vmem>>, vector<128x128xbf16>
    %cst_23 = arith.constant dense<0.000000e+00> : vector<128x128xf32>
    %41 = tpu.matmul %39, %40, %cst_23 {dimension_numbers = #tpu.dot_dimension_numbers<[1], [0], [0], [1], [0, 0, 1, 1], [], []>} : vector<128x128xbf16>, vector<128x128xbf16>, vector<128x128xf32> -> vector<128x128xf32>
    %cst_24 = arith.constant 2.000000e+00 : f32
    %42 = vector.broadcast %cst_24 : f32 to vector<1x128xf32>
    %43 = arith.mulf %42, %33 : vector<1x128xf32>
    %44 = vector.broadcast %43 : vector<1x128xf32> to vector<128x128xf32>
    %45 = arith.addf %41, %44 : vector<128x128xf32>
    %c0_25 = arith.constant 0 : index
    %c0_26 = arith.constant 0 : index
    %46 = vector.load %arg8[%c0_25, %c0_26] : memref<128x128xf32, #tpu.memory_space<vmem>>, vector<128x128xf32>
    tpu.vector_store %arg8[%c0_25, %c0_26], %45 {strides = array<i32>} : memref<128x128xf32, #tpu.memory_space<vmem>>, vector<128x128xf32>,
    return
  }
  func.func @transform_0(%arg0: i32) -> (i32, i32) {
    %c0_i32 = arith.constant 0 : i32
    %c0_i32_0 = arith.constant 0 : i32
    return %arg0, %c0_i32 : i32, i32
  }
  func.func @transform_1(%arg0: i32) -> (i32, i32) {
    %c0_i32 = arith.constant 0 : i32
    %c0_i32_0 = arith.constant 0 : i32
    %c0_i32_1 = arith.constant 0 : i32
    return %c0_i32, %c0_i32_0 : i32, i32
  }
  func.func @transform_2(%arg0: i32) -> (i32, i32) {
    %c0_i32 = arith.constant 0 : i32
    %c0_i32_0 = arith.constant 0 : i32
    %c0_i32_1 = arith.constant 0 : i32
    return %c0_i32, %c0_i32_0 : i32, i32
  }
  func.func @transform_3(%arg0: i32) -> (i32, i32) {
    %c0_i32 = arith.constant 0 : i32
    %c0_i32_0 = arith.constant 0 : i32
    %c0_i32_1 = arith.constant 0 : i32
    return %c0_i32, %c0_i32_0 : i32, i32
  }
  func.func @transform_4(%arg0: i32) -> (i32, i32) {
    %c0_i32 = arith.constant 0 : i32
    %c0_i32_0 = arith.constant 0 : i32
    %c0_i32_1 = arith.constant 0 : i32
    return %c0_i32, %c0_i32_0 : i32, i32
  }
  func.func @transform_5(%arg0: i32) -> (i32, i32) {
    %c0_i32 = arith.constant 0 : i32
    %c0_i32_0 = arith.constant 0 : i32
    %c0_i32_1 = arith.constant 0 : i32
    return %c0_i32, %c0_i32_0 : i32, i32
  }
  func.func @transform_6(%arg0: i32) -> (i32, i32) {
    %c0_i32 = arith.constant 0 : i32
    %c0_i32_0 = arith.constant 0 : i32
    %c0_i32_1 = arith.constant 0 : i32
    return %c0_i32, %c0_i32_0 : i32, i32
  }
  func.func @transform_7(%arg0: i32) -> (i32, i32) {
    %c0_i32 = arith.constant 0 : i32
    %c0_i32_0 = arith.constant 0 : i32
    return %arg0, %c0_i32 : i32, i32
  }
}

</mosaic_0001>

<bundles_post_ra>
// kernel: tpu_custom_call.1
= control target key start
LH: loop header
LB: loop body
LE: loop exit
PB: predicated region body
PF: predicated region fallthrough
CT: control target
= control target key end

     0   :  { %12 = vsyncpa [#allocation3], 0  ;;  %s2121_s0 = inlined_call_operand.hbm [shape: f32[128,128], index: 0, kind: input, shape index: {}]   ;;  %s2122_s1 = inlined_call_operand.hbm [shape: bf16[128,256], index: 1, kind: input, shape index: {}]   ;;  %s2123_s2 = inlined_call_operand.vmem [shape: f32[1,512], index: 2, kind: input, shape index: {}]   ;;  %s2124_s3 = inlined_call_operand.hbm [shape: bf16[256,128], index: 3, kind: input, shape index: {}]   ;;  %s2125_s4 = inlined_call_operand.vmem [shape: f32[1,640], index: 4, kind: input, shape index: {}]   ;;  %s2126_s5 = inlined_call_operand.hbm [shape: bf16[128,128], index: 5, kind: input, shape index: {}]   ;;  %s2127_s6 = inlined_call_operand.vmem [shape: f32[1,384], index: 6, kind: input, shape index: {}]   ;;  %s2128_s7 = inlined_call_operand.hbm [shape: f32[128,128], index: 7, kind: output, shape index: {}]  }
   0x1   :  { %13 = vsyncpa [#allocation6], 0 }
   0x2   :  { %14 = vsyncpa [#allocation9], 0 }
   0x3   :  { %15 = vsyncpa [#allocation4], 0  ;;  %s1549_s24 = smov [#allocation5]   ;;  %s1550_s26 = smov [#allocation2]  }
   0x4   :  { %s33_s25 = sshll.u32 %s1549_s24, 4  ;;  %s21_s27 = sshll.u32 %s1550_s26, 4  ;;  %s34_s25 = int_to_ptr.vmem [resolvable:$true] %s33_s25  ;;  %s1599_s27 = int_to_ptr.vmem [resolvable:$true] %s21_s27 }
   0x5   :  { %s1431_s30 = scalar_lea.hbm %s2122_s1, 2048 }
   0x6   :  { %p1432_p0 = scmp.ne.s32.totalorder %s2122_s1, %s1431_s30  ;;  %p1435_p1 = scmp.lt.u32.totalorder %s1431_s30, %s2122_s1 }
   0x8   :  { %p1437_p2 = pnand %p1435_p1, %p1432_p0 }
   0xa   :  { %1440 = shalt.err (!%p1437_p2)
}
   0xb   :  { %s1441_s12 = scalar_lea.vmem %s34_s25, 2048  ;;  %p1446_p4 = scmp.lt.s32.totalorder %s34_s25, %s34_s25 }
   0xc   :  { %p1442_p3 = scmp.ne.s32.totalorder %s34_s25, %s1441_s12  ;;  %p1447_p5 = scmp.lt.s32.totalorder %s1441_s12, %s1441_s12 }
   0xe   :  { %p1448_p6 = por %p1447_p5, %p1446_p4 }
  0x10   :  { %p1449_p7 = pnand %p1448_p6, %p1442_p3 }
  0x12   :  { %1452 = shalt.err (!%p1449_p7)
}
  0x13   :  { %s1551_s13 = smov 128   ;;  %s1552_s14 = smov 8  }
  0x14   :  { %39 = dma.hbm_to_vmem [thread:$0]  %s2122_s1, 2048, %s34_s25, [#allocation6], %s1551_s13, %s1551_s13, %s1552_s14  }
  0x15   :  { %s1453_s19 = scalar_lea.hbm %s2121_s0, 2048 }
  0x16   :  { %p1454_p8 = scmp.ne.s32.totalorder %s2121_s0, %s1453_s19  ;;  %p1457_p9 = scmp.lt.u32.totalorder %s1453_s19, %s2121_s0 }
  0x18   :  { %p1459_p10 = pnand %p1457_p9, %p1454_p8 }
  0x1a   :  { %1462 = shalt.err (!%p1459_p10)
}
  0x1b   :  { %s1463_s24 = scalar_lea.vmem %s1599_s27, 2048  ;;  %p1468_p12 = scmp.lt.s32.totalorder %s1599_s27, %s1599_s27 }
  0x1c   :  { %p1464_p11 = scmp.ne.s32.totalorder %s1599_s27, %s1463_s24  ;;  %p1469_p13 = scmp.lt.s32.totalorder %s1463_s24, %s1463_s24 }
  0x1e   :  { %p1470_p0 = por %p1469_p13, %p1468_p12 }
  0x20   :  { %p1471_p1 = pnand %p1470_p0, %p1464_p11 }
  0x22   :  { %1474 = shalt.err (!%p1471_p1)
}
  0x23   :  { %27 = dma.hbm_to_vmem [thread:$0]  %s2121_s0, 2048, %s1599_s27, [#allocation3], %s1551_s13, %s1551_s13, %s1552_s14  }
  0x24   :  { %s1553_s26 = smov [#allocation7]   ;;  %s1475_s8 = scalar_lea.hbm %s2124_s3, 2048 }
  0x25   :  { %s47_s28 = sshll.u32 %s1553_s26, 4  ;;  %p1476_p2 = scmp.ne.s32.totalorder %s2124_s3, %s1475_s8  ;;  %s48_s28 = int_to_ptr.vmem [resolvable:$true] %s47_s28 }
  0x26   :  { %p1479_p3 = scmp.lt.u32.totalorder %s1475_s8, %s2124_s3 }
  0x28   :  { %p1481_p4 = pnand %p1479_p3, %p1476_p2 }
  0x2a   :  { %1484 = shalt.err (!%p1481_p4)
}
  0x2b   :  { %s1485_s15 = scalar_lea.vmem %s48_s28, 2048  ;;  %p1490_p6 = scmp.lt.s32.totalorder %s48_s28, %s48_s28 }
  0x2c   :  { %p1486_p5 = scmp.ne.s32.totalorder %s48_s28, %s1485_s15  ;;  %p1491_p7 = scmp.lt.s32.totalorder %s1485_s15, %s1485_s15 }
  0x2e   :  { %p1492_p8 = por %p1491_p7, %p1490_p6 }
  0x30   :  { %p1493_p9 = pnand %p1492_p8, %p1486_p5 }
  0x32   :  { %1496 = shalt.err (!%p1493_p9)
}
  0x33   :  { %s1554_s0 = smov 64   ;;  %s1555_s27 = smov 4  }
  0x34   :  { %53 = dma.hbm_to_vmem [thread:$0]  %s2124_s3, 2048, %s48_s28, [#allocation6], %s1554_s0, %s1554_s0, %s1555_s27  }
  0x35   :  { %s1556_s18 = smov [#allocation8]   ;;  %s1497_s22 = scalar_lea.hbm %s2126_s5, 1024 }
  0x36   :  { %s61_s19 = sshll.u32 %s1556_s18, 4  ;;  %p1498_p10 = scmp.ne.s32.totalorder %s2126_s5, %s1497_s22  ;;  %s62_s19 = int_to_ptr.vmem [resolvable:$true] %s61_s19 }
  0x37   :  { %p1501_p11 = scmp.lt.u32.totalorder %s1497_s22, %s2126_s5 }
  0x39   :  { %p1503_p12 = pnand %p1501_p11, %p1498_p10 }
  0x3b   :  { %1506 = shalt.err (!%p1503_p12)
}
  0x3c   :  { %s1507_s26 = scalar_lea.vmem %s62_s19, 1024  ;;  %p1512_p0 = scmp.lt.s32.totalorder %s62_s19, %s62_s19 }
  0x3d   :  { %p1508_p13 = scmp.ne.s32.totalorder %s62_s19, %s1507_s26  ;;  %p1513_p1 = scmp.lt.s32.totalorder %s1507_s26, %s1507_s26 }
  0x3f   :  { %p1514_p2 = por %p1513_p1, %p1512_p0 }
  0x41   :  { %p1515_p3 = pnand %p1514_p2, %p1508_p13 }
  0x43   :  { %1518 = shalt.err (!%p1515_p3)
}
  0x44   :  { %67 = dma.hbm_to_vmem [thread:$0]  %s2126_s5, 1024, %s62_s19, [#allocation9], %s1554_s0, %s1554_s0, %s1555_s27  }
  0x45   :  { %1541 = dma.done.wait [#allocation3], 2048  }
  0x46   :  { %1542 = vsyncadd [#allocation3], 4294965248 }
  0x47   :  { %1543 = dma.done.wait [#allocation6], 4096  }
  0x48   :  { %1544 = vsyncadd [#allocation6], 4294963200 }
  0x49   :  { %1545 = dma.done.wait [#allocation9], 1024  }
  0x4a   :  { %1546 = vsyncadd [#allocation9], 4294966272  ;;  %v1557_v0 = vmov 0   ;;  %v1383_v1 = vld [vmem:[#allocation5 + $0x4] ss:$8 sps:$4 sm:$0xff]   ;;  %v1661_v14 = vld [vmem:[#allocation2 + $0x10] sm:$0xff] }
  0x4b   :  { %301 = vmatprep.mubr.bf16.mxu0 %v1557_v0  ;;  %v1385_v2 = vld [vmem:[#allocation5] ss:$8 sps:$4 sm:$0xff]   ;;  %269 = vmatprep.subr.bf16.mxu0 %v1383_v1  ;;  %v1386_v3 = vld [vmem:[#allocation5 + $0x14] ss:$8 sps:$4 sm:$0xff]   ;;  %v1388_v4 = vld [vmem:[#allocation5 + $0x10] ss:$8 sps:$4 sm:$0xff]  }
  0x4c   :  { %270 = vmatpush1.bf16.msra.mxu0 %v1385_v2  ;;  %v1389_v5 = vld [vmem:[#allocation5 + $0x24] ss:$8 sps:$4 sm:$0xff]   ;;  %v1391_v6 = vld [vmem:[#allocation5 + $0x20] ss:$8 sps:$4 sm:$0xff]   ;;  %v1392_v7 = vld [vmem:[#allocation5 + $0x34] ss:$8 sps:$4 sm:$0xff]  }
  0x4d   :  { %271 = vmatprep.subr.bf16.mxu0 %v1386_v3  ;;  %v1394_v8 = vld [vmem:[#allocation5 + $0x30] ss:$8 sps:$4 sm:$0xff]   ;;  %v1395_v9 = vld [vmem:[#allocation5 + $0x44] ss:$8 sps:$4 sm:$0xff]   ;;  %v1397_v10 = vld [vmem:[#allocation5 + $0x40] ss:$8 sps:$4 sm:$0xff]  }
  0x4e   :  { %v1398_v11 = vld [vmem:[#allocation5 + $0x54] ss:$8 sps:$4 sm:$0xff]   ;;  %v83_v12 = vld [vmem:[#allocation2] sm:$0xff]  ;;  %v84_v13 = vld [vmem:[#allocation2 + $0x8] sm:$0xff] }
  0x4f   :  { %v1663_v15 = vld [vmem:[#allocation2 + $0x18] sm:$0xff]  ;;  %v1665_v16 = vld [vmem:[#allocation2 + $0x20] sm:$0xff]  ;;  %v1667_v17 = vld [vmem:[#allocation2 + $0x28] sm:$0xff] }
  0x50   :  { %272 = vmatpush1.bf16.msra.mxu0 %v1388_v4  ;;  %v1153_v18 = vld [vmem:[%s2123_s2 + $0x1] ss:$0 sm:$0xff]  ;;  %v1400_v19 = vld [vmem:[#allocation5 + $0x50] ss:$8 sps:$4 sm:$0xff]   ;;  %v1401_v24 = vld [vmem:[#allocation5 + $0x64] ss:$8 sps:$4 sm:$0xff]  }
  0x51   :  { %273 = vmatprep.subr.bf16.mxu0 %v1389_v5  ;;  %v1672_v20 = vld [vmem:[#allocation2 + $0x30] sm:$0xff]  ;;  %v1674_v21 = vld [vmem:[#allocation2 + $0x38] sm:$0xff]  ;;  %v1676_v22 = vld [vmem:[#allocation2 + $0x40] sm:$0xff]  ;;  %v1678_v23 = vmul.f32 %v1153_v18, %v83_v12  ;;  %v1684_v27 = vmul.f32 %v1153_v18, %v84_v13  ;;  %v1687_v28 = vmul.f32 %v1153_v18, %v1661_v14  ;;  %v1696_v32 = vmul.f32 %v1153_v18, %v1663_v15 }
  0x52   :  { %v1680_v25 = vld [vmem:[#allocation2 + $0x48] sm:$0xff]  ;;  %v1682_v26 = vld [vmem:[#allocation2 + $0x50] sm:$0xff]  ;;  %v1689_v29 = vld [vmem:[#allocation2 + $0x58] sm:$0xff]  ;;  %v1699_v33 = vmul.f32 %v1153_v18, %v1665_v16  ;;  %v1702_v34 = vmul.f32 %v1153_v18, %v1667_v17  ;;  %v1711_v38 = vmul.f32 %v1153_v18, %v1672_v20  ;;  %v1714_v39 = vmul.f32 %v1153_v18, %v1674_v21 }
  0x53   :  { %v1691_v30 = vld [vmem:[#allocation2 + $0x60] sm:$0xff]  ;;  %v1693_v31 = vld [vmem:[#allocation2 + $0x68] sm:$0xff]  ;;  %v1704_v35 = vld [vmem:[#allocation2 + $0x70] sm:$0xff]  ;;  %v154_v37 = vpack.c.bf16 %v1684_v27, %v1678_v23  ;;  %v1717_v40 = vmul.f32 %v1153_v18, %v1676_v22  ;;  %v155_v43 = vpack.c.bf16 %v1696_v32, %v1687_v28  ;;  %v1729_v45 = vmul.f32 %v1153_v18, %v1680_v25 }
  0x54   :  { %274 = vmatpush1.bf16.msra.mxu0 %v1391_v6  ;;  %v1706_v36 = vld [vmem:[#allocation2 + $0x78] sm:$0xff]  ;;  %v1403_v41 = vld [vmem:[#allocation5 + $0x60] ss:$8 sps:$4 sm:$0xff]   ;;  %v156_v44 = vpack.c.bf16 %v1702_v34, %v1699_v33  ;;  %v1732_v46 = vmul.f32 %v1153_v18, %v1682_v26  ;;  %v157_v48 = vpack.c.bf16 %v1714_v39, %v1711_v38  ;;  %v1737_v49 = vmul.f32 %v1153_v18, %v1689_v29  ;;  %v1411_v3 = vld [vmem:[#allocation7 + $0x50] sm:$0xff]  }
  0x55   :  { %275 = vmatprep.subr.bf16.mxu0 %v1392_v7  ;;  %v1722_v42 = vld [vmem:[%s2123_s2] ss:$0 sm:$0xff]  ;;  %v1404_v47 = vld [vmem:[#allocation5 + $0x74] ss:$8 sps:$4 sm:$0xff]   ;;  %v1740_v50 = vmul.f32 %v1153_v18, %v1691_v30  ;;  %v1743_v51 = vmul.f32 %v1153_v18, %v1693_v31  ;;  %v158_v52 = vpack.c.bf16 %v1729_v45, %v1717_v40  ;;  %v1748_v53 = vmul.f32 %v1153_v18, %v1704_v35  ;;  %v1409_v62 = vld [vmem:[#allocation7 + $0x48] sm:$0xff]  }
  0x56   :  { %v1751_v54 = vmul.f32 %v1153_v18, %v1706_v36  ;;  %v159_v55 = vpack.c.bf16 %v1737_v49, %v1732_v46  ;;  %v108_v58 = vmul.f32 %v1722_v42, %v83_v12  ;;  %v109_v59 = vmul.f32 %v1722_v42, %v84_v13  ;;  %v1407_v60 = vld [vmem:[#allocation7 + $0x40] sm:$0xff]   ;;  %v1406_v63 = vld [vmem:[#allocation5 + $0x70] ss:$8 sps:$4 sm:$0xff]   ;;  %v1410_v1 = vld [vmem:[#allocation7 + $0x8] sm:$0xff]  }
  0x57   :  { %v160_v56 = vpack.c.bf16 %v1743_v51, %v1740_v50  ;;  %v1408_v61 = vld [vmem:[#allocation7] sm:$0xff]   ;;  %1197 = vmatprep.subr.bf16.mxu1 %v1407_v60  ;;  %v1412_v4 = vld [vmem:[#allocation7 + $0x10] sm:$0xff]   ;;  %v1413_v5 = vld [vmem:[#allocation7 + $0x58] sm:$0xff]   ;;  %v110_v6 = vmul.f32 %v1722_v42, %v1661_v14  ;;  %v111_v7 = vmul.f32 %v1722_v42, %v1663_v15  ;;  %v112_v12 = vmul.f32 %v1722_v42, %v1665_v16 }
  0x58   :  { %276 = vmatpush1.bf16.msra.mxu0 %v1394_v8  ;;  %v161_v57 = vpack.c.bf16 %v1751_v54, %v1748_v53  ;;  %1198 = vmatpush3.bf16.msra.mxu1 %v1408_v61  ;;  %v146_v2 = vpack.c.bf16 %v109_v59, %v108_v58  ;;  %v1414_v8 = vld [vmem:[#allocation7 + $0x18] sm:$0xff]   ;;  %v113_v13 = vmul.f32 %v1722_v42, %v1667_v17  ;;  %v1417_v14 = vld [vmem:[#allocation7 + $0x68] sm:$0xff]   ;;  %v179_v28 = vlaneseq  ;;  %v101_v34 = vld [vmem:[%s2123_s2 + $0x2] sm:$0x3] }
  0x59   :  { %277 = vmatprep.subr.bf16.mxu0 %v1395_v9  ;;  %1199 = vmatprep.subr.bf16.mxu1 %v1409_v62  ;;  %v147_v9 = vpack.c.bf16 %v111_v7, %v110_v6  ;;  %v114_v18 = vmul.f32 %v1722_v42, %v1672_v20  ;;  %v116_v17 = vmul.f32 %v1722_v42, %v1676_v22  ;;  %v1421_v23 = vld [vmem:[#allocation7 + $0x78] sm:$0xff]   ;;  %v1423_v50 = vld [vmem:[#allocation8] sm:$0xff]  }
  0x5a   :  { %v148_v15 = vpack.c.bf16 %v113_v13, %v112_v12  ;;  %v118_v20 = vmul.f32 %v1722_v42, %v1682_v26  ;;  %v120_v22 = vmul.f32 %v1722_v42, %v1691_v30  ;;  %v122_v26 = vmul.f32 %v1722_v42, %v1704_v35  ;;  %v1418_v30 = vld [vmem:[#allocation7 + $0x28] sm:$0xff]   ;;  %v1420_v35 = vld [vmem:[#allocation7 + $0x30] sm:$0xff]   ;;  %v1422_v27 = vld [vmem:[#allocation7 + $0x38] sm:$0xff]  }
  0x5b   :  { %v180_v32 = vshrl.u32 %v179_v28, 7 }
  0x5c   :  { %278 = vmatpush1.bf16.msra.mxu0 %v1397_v10  ;;  %1200 = vmatpush3.bf16.msra.mxu1 %v1410_v1  ;;  %v1415_v10 = vld [vmem:[#allocation7 + $0x60] sm:$0xff]  }
  0x5d   :  { %279 = vmatprep.subr.bf16.mxu0 %v1398_v11  ;;  %1201 = vmatprep.subr.bf16.mxu1 %v1411_v3  ;;  %v1416_v11 = vld [vmem:[#allocation7 + $0x20] sm:$0xff]   ;;  %v1828_v33 = vsub.s32 0, %v180_v32 }
  0x60   :  { %280 = vmatpush1.bf16.msra.mxu0 %v1400_v19  ;;  %1202 = vmatpush3.bf16.msra.mxu1 %v1412_v4  ;;  %v115_v19 = vmul.f32 %v1722_v42, %v1674_v21  ;;  %v119_v21 = vmul.f32 %v1722_v42, %v1689_v29  ;;  %v123_v29 = vmul.f32 %v1722_v42, %v1706_v36  ;;  %v1833_v36 = vsub.s32 1, %v180_v32 }
  0x61   :  { %281 = vmatprep.subr.bf16.mxu0 %v1401_v24  ;;  %1203 = vmatprep.subr.bf16.mxu1 %v1413_v5  ;;  %v117_v24 = vmul.f32 %v1722_v42, %v1680_v25  ;;  %v121_v25 = vmul.f32 %v1722_v42, %v1693_v31  ;;  %v1419_v31 = vld [vmem:[#allocation7 + $0x70] sm:$0xff]  }
  0x62   :  { %v149_v16 = vpack.c.bf16 %v115_v19, %v114_v18  ;;  %v153_v59 = vpack.c.bf16 %v123_v29, %v122_v26  ;;  %v1842_v38 = vrot.slane %v101_v34, %v1833_v36 }
  0x63   :  { %v152_v58 = vpack.c.bf16 %v121_v25, %v120_v22 }
  0x64   :  { %282 = vmatpush1.bf16.msra.mxu0 %v1403_v41  ;;  %1204 = vmatpush3.bf16.msra.mxu1 %v1414_v8  ;;  %v150_v41 = vpack.c.bf16 %v117_v24, %v116_v17 }
  0x65   :  { %283 = vmatprep.subr.bf16.mxu0 %v1404_v47  ;;  %1205 = vmatprep.subr.bf16.mxu1 %v1415_v10  ;;  %v151_v47 = vpack.c.bf16 %v119_v21, %v118_v20 }
  0x68   :  { %284 = vmatpush1.bf16.msra.mxu0 %v1406_v63  ;;  %1206 = vmatpush3.bf16.msra.mxu1 %v1416_v11 }
  0x69   :  { %1207 = vmatprep.subr.bf16.mxu1 %v1417_v14  ;;  %1325 = vmatprep.subr.bf16.mxu0 %v1423_v50 }
  0x6b   :  { %302 = vmatmul.mubr.bf16.vlgmr.msra.gmra.mrb[0].mxu0 %v146_v2 }
  0x6c   :  { %311 = vmatprep.mubr.bf16.mxu0 %v1557_v0  ;;  %1208 = vmatpush3.bf16.msra.mxu1 %v1418_v30 }
  0x6d   :  { %1209 = vmatprep.subr.bf16.mxu1 %v1419_v31  ;;  %1326 = vmatpush3.bf16.msra.mxu0 %v1423_v50 }
  0x70   :  { %1210 = vmatpush3.bf16.msra.mxu1 %v1420_v35 }
  0x71   :  { %1211 = vmatprep.subr.bf16.mxu1 %v1421_v23 }
  0x73   :  { %312 = vmatmul.mubr.bf16.gmra.mrb[4].mxu0 %v147_v9 }
  0x74   :  { %321 = vmatprep.mubr.bf16.mxu0 %v1557_v0  ;;  %1212 = vmatpush3.bf16.msra.mxu1 %v1422_v27 }
  0x75   :  { %1357 = vmatprep.subr.bf16.mxu1 %v1423_v50 }
  0x7b   :  { %322 = vmatmul.mubr.bf16.gmra.mrb[8].mxu0 %v148_v15 }
  0x7c   :  { %331 = vmatprep.mubr.bf16.mxu0 %v1557_v0 }
  0x83   :  { %332 = vmatmul.mubr.bf16.gmra.mrb[12].mxu0 %v149_v16 }
  0x84   :  { %341 = vmatprep.mubr.bf16.mxu0 %v1557_v0 }
  0x8b   :  { %342 = vmatmul.mubr.bf16.gmra.mrb[16].mxu0 %v150_v41 }
  0x8c   :  { %351 = vmatprep.mubr.bf16.mxu0 %v1557_v0 }
  0x93   :  { %352 = vmatmul.mubr.bf16.gmra.mrb[20].mxu0 %v151_v47 }
  0x94   :  { %361 = vmatprep.mubr.bf16.mxu0 %v1557_v0 }
  0x9b   :  { %362 = vmatmul.mubr.bf16.gmra.mrb[24].mxu0 %v152_v58 }
  0x9c   :  { %371 = vmatprep.mubr.bf16.mxu0 %v1557_v0 }
  0xa3   :  { %372 = vmatmul.mubr.bf16.gmra.mrb[28].mxu0 %v153_v59 }
  0xa4   :  { %381 = vmatprep.mubr.bf16.mxu0 %v1557_v0 }
  0xab   :  { %382 = vmatmul.mubr.bf16.gmra.mrb[32].mxu0 %v154_v37  ;;  %v1836_v37 = vrot.slane %v101_v34, %v1828_v33 }
  0xac   :  { %391 = vmatprep.mubr.bf16.mxu0 %v1557_v0 }
  0xb3   :  { %392 = vmatmul.mubr.bf16.gmra.mrb[36].mxu0 %v155_v43 }
  0xb4   :  { %401 = vmatprep.mubr.bf16.mxu0 %v1557_v0 }
  0xbb   :  { %402 = vmatmul.mubr.bf16.gmra.mrb[40].mxu0 %v156_v44 }
  0xbc   :  { %411 = vmatprep.mubr.bf16.mxu0 %v1557_v0 }
  0xc3   :  { %412 = vmatmul.mubr.bf16.gmra.mrb[44].mxu0 %v157_v48 }
  0xc4   :  { %421 = vmatprep.mubr.bf16.mxu0 %v1557_v0 }
  0xcb   :  { %422 = vmatmul.mubr.bf16.gmra.mrb[48].mxu0 %v158_v52 }
  0xcc   :  { %431 = vmatprep.mubr.bf16.mxu0 %v1557_v0 }
  0xd3   :  { %432 = vmatmul.mubr.bf16.gmra.mrb[52].mxu0 %v159_v55 }
  0xd4   :  { %441 = vmatprep.mubr.bf16.mxu0 %v1557_v0 }
  0xdb   :  { %442 = vmatmul.mubr.bf16.gmra.mrb[56].mxu0 %v160_v56 }
  0xdc   :  { %451 = vmatprep.mubr.bf16.mxu0 %v1557_v0  ;;  %v462_v0 = vld [vmem:[%s2125_s4] sm:$0x3] }
  0xdd   :  { %v1846_v42 = vrot.slane %v462_v0, %v1828_v33  ;;  %v1850_v46 = vrot.slane %v462_v0, %v1833_v36 }
  0xe3   :  { %452 = vmatmul.mubr.bf16.gmra.mrb[60].mxu0 %v161_v57 }
 0x13e   :  { %v303_v39 = vpop.f32.mrb[0].mxu0 }
 0x13f   :  { %v304_v40 = vadd.f32 %v303_v39, %v1836_v37  ;;  %v305_v43 = vpop.f32.mrb[1].mxu0 }
 0x140   :  { %v306_v44 = vadd.f32 %v305_v43, %v1842_v38  ;;  %v307_v45 = vpop.f32.mrb[2].mxu0 }
 0x141   :  { %v308_v48 = vadd.f32 %v307_v45, %v1836_v37  ;;  %v309_v49 = vpop.f32.mrb[3].mxu0  ;;  %v476_v52 = vmul.f32 %v1846_v42, %v304_v40 }
 0x142   :  { %v310_v51 = vadd.f32 %v309_v49, %v1842_v38  ;;  %v477_v54 = vmul.f32 %v1850_v46, %v306_v44 }
 0x143   :  { %v478_v53 = vmul.f32 %v1846_v42, %v308_v48 }
 0x144   :  { %v479_v55 = vmul.f32 %v1850_v46, %v310_v51 }
 0x145   :  { %v551_v56 = vpack.c.bf16 %v478_v53, %v476_v52 }
 0x146   :  { %v313_v57 = vpop.f32.mrb[4].mxu0  ;;  %v552_v60 = vpack.c.bf16 %v479_v55, %v477_v54 }
 0x147   :  { %v314_v61 = vadd.f32 %v313_v57, %v1836_v37  ;;  %v315_v62 = vpop.f32.mrb[5].mxu0 }
 0x148   :  { %v316_v63 = vadd.f32 %v315_v62, %v1842_v38  ;;  %v317_v1 = vpop.f32.mrb[6].mxu0  ;;  %749 = vmatprep.mubr.bf16.mxu1 %v552_v60 }
 0x149   :  { %v318_v2 = vadd.f32 %v317_v1, %v1836_v37  ;;  %v319_v3 = vpop.f32.mrb[7].mxu0  ;;  %750 = vmatmul.mubr.bf16.vlgmr.msra.gmra.mrb[0].mxu1 %v551_v56  ;;  %v480_v5 = vmul.f32 %v1846_v42, %v314_v61 }
 0x14a   :  { %v320_v4 = vadd.f32 %v319_v3, %v1842_v38  ;;  %1365 = vmatpush3.bf16.msra.mxu1 %v1423_v50  ;;  %v481_v7 = vmul.f32 %v1850_v46, %v316_v63 }
 0x14b   :  { %v482_v6 = vmul.f32 %v1846_v42, %v318_v2 }
 0x14c   :  { %v483_v8 = vmul.f32 %v1850_v46, %v320_v4 }
 0x14d   :  { %v553_v9 = vpack.c.bf16 %v482_v6, %v480_v5 }
 0x14e   :  { %v323_v10 = vpop.f32.mrb[8].mxu0  ;;  %v554_v11 = vpack.c.bf16 %v483_v8, %v481_v7 }
 0x14f   :  { %v324_v12 = vadd.f32 %v323_v10, %v1836_v37  ;;  %v325_v13 = vpop.f32.mrb[9].mxu0 }
 0x150   :  { %v326_v14 = vadd.f32 %v325_v13, %v1842_v38  ;;  %v327_v15 = vpop.f32.mrb[10].mxu0  ;;  %757 = vmatprep.mubr.bf16.mxu1 %v554_v11 }
 0x151   :  { %v328_v18 = vadd.f32 %v327_v15, %v1836_v37  ;;  %v329_v19 = vpop.f32.mrb[11].mxu0  ;;  %758 = vmatmul.mubr.bf16.gmra.mrb[4].mxu1 %v553_v9  ;;  %v484_v17 = vmul.f32 %v1846_v42, %v324_v12 }
 0x152   :  { %v330_v16 = vadd.f32 %v329_v19, %v1842_v38  ;;  %v485_v41 = vmul.f32 %v1850_v46, %v326_v14 }
 0x153   :  { %v486_v24 = vmul.f32 %v1846_v42, %v328_v18 }
 0x154   :  { %v487_v20 = vmul.f32 %v1850_v46, %v330_v16 }
 0x155   :  { %v555_v21 = vpack.c.bf16 %v486_v24, %v484_v17 }
 0x156   :  { %v333_v47 = vpop.f32.mrb[12].mxu0  ;;  %v556_v22 = vpack.c.bf16 %v487_v20, %v485_v41 }
 0x157   :  { %v334_v25 = vadd.f32 %v333_v47, %v1836_v37  ;;  %v335_v58 = vpop.f32.mrb[13].mxu0 }
 0x158   :  { %v336_v26 = vadd.f32 %v335_v58, %v1842_v38  ;;  %v337_v29 = vpop.f32.mrb[14].mxu0  ;;  %765 = vmatprep.mubr.bf16.mxu1 %v556_v22 }
 0x159   :  { %v338_v59 = vadd.f32 %v337_v29, %v1836_v37  ;;  %v339_v30 = vpop.f32.mrb[15].mxu0  ;;  %766 = vmatmul.mubr.bf16.gmra.mrb[8].mxu1 %v555_v21  ;;  %v488_v35 = vmul.f32 %v1846_v42, %v334_v25 }
 0x15a   :  { %v340_v31 = vadd.f32 %v339_v30, %v1842_v38  ;;  %v489_v27 = vmul.f32 %v1850_v46, %v336_v26 }
 0x15b   :  { %v490_v23 = vmul.f32 %v1846_v42, %v338_v59 }
 0x15c   :  { %v491_v28 = vmul.f32 %v1850_v46, %v340_v31 }
 0x15d   :  { %v557_v32 = vpack.c.bf16 %v490_v23, %v488_v35 }
 0x15e   :  { %v343_v34 = vpop.f32.mrb[16].mxu0  ;;  %v558_v0 = vpack.c.bf16 %v491_v28, %v489_v27  ;;  %v463_v27 = vld [vmem:[%s2125_s4 + $0x2] sm:$0x3] }
 0x15f   :  { %v344_v39 = vadd.f32 %v343_v34, %v1836_v37  ;;  %v345_v40 = vpop.f32.mrb[17].mxu0 }
 0x160   :  { %v346_v43 = vadd.f32 %v345_v40, %v1842_v38  ;;  %v347_v44 = vpop.f32.mrb[18].mxu0  ;;  %773 = vmatprep.mubr.bf16.mxu1 %v558_v0 }
 0x161   :  { %v348_v45 = vadd.f32 %v347_v44, %v1836_v37  ;;  %v349_v48 = vpop.f32.mrb[19].mxu0  ;;  %774 = vmatmul.mubr.bf16.gmra.mrb[12].mxu1 %v557_v32  ;;  %v492_v50 = vmul.f32 %v1846_v42, %v344_v39  ;;  %v1919_v39 = vrot.slane %v463_v27, %v1828_v33 }
 0x162   :  { %v350_v49 = vadd.f32 %v349_v48, %v1842_v38  ;;  %v493_v52 = vmul.f32 %v1850_v46, %v346_v43 }
 0x163   :  { %v494_v51 = vmul.f32 %v1846_v42, %v348_v45 }
 0x164   :  { %v495_v53 = vmul.f32 %v1850_v46, %v350_v49 }
 0x165   :  { %v559_v54 = vpack.c.bf16 %v494_v51, %v492_v50 }
 0x166   :  { %v353_v55 = vpop.f32.mrb[20].mxu0  ;;  %v560_v56 = vpack.c.bf16 %v495_v53, %v493_v52 }
 0x167   :  { %v354_v57 = vadd.f32 %v353_v55, %v1836_v37  ;;  %v355_v60 = vpop.f32.mrb[21].mxu0 }
 0x168   :  { %v356_v61 = vadd.f32 %v355_v60, %v1842_v38  ;;  %v357_v62 = vpop.f32.mrb[22].mxu0  ;;  %781 = vmatprep.mubr.bf16.mxu1 %v560_v56 }
 0x169   :  { %v358_v63 = vadd.f32 %v357_v62, %v1836_v37  ;;  %v359_v1 = vpop.f32.mrb[23].mxu0  ;;  %782 = vmatmul.mubr.bf16.gmra.mrb[16].mxu1 %v559_v54  ;;  %v496_v3 = vmul.f32 %v1846_v42, %v354_v57 }
 0x16a   :  { %v360_v2 = vadd.f32 %v359_v1, %v1842_v38  ;;  %v497_v5 = vmul.f32 %v1850_v46, %v356_v61 }
 0x16b   :  { %v498_v4 = vmul.f32 %v1846_v42, %v358_v63 }
 0x16c   :  { %v499_v6 = vmul.f32 %v1850_v46, %v360_v2 }
 0x16d   :  { %v561_v7 = vpack.c.bf16 %v498_v4, %v496_v3 }
 0x16e   :  { %v363_v8 = vpop.f32.mrb[24].mxu0  ;;  %v562_v9 = vpack.c.bf16 %v499_v6, %v497_v5 }
 0x16f   :  { %v364_v10 = vadd.f32 %v363_v8, %v1836_v37  ;;  %v365_v11 = vpop.f32.mrb[25].mxu0 }
 0x170   :  { %v366_v12 = vadd.f32 %v365_v11, %v1842_v38  ;;  %v367_v13 = vpop.f32.mrb[26].mxu0  ;;  %789 = vmatprep.mubr.bf16.mxu1 %v562_v9 }
 0x171   :  { %v368_v14 = vadd.f32 %v367_v13, %v1836_v37  ;;  %v369_v15 = vpop.f32.mrb[27].mxu0  ;;  %790 = vmatmul.mubr.bf16.gmra.mrb[20].mxu1 %v561_v7  ;;  %v500_v19 = vmul.f32 %v1846_v42, %v364_v10 }
 0x172   :  { %v370_v18 = vadd.f32 %v369_v15, %v1842_v38  ;;  %v501_v17 = vmul.f32 %v1850_v46, %v366_v12 }
 0x173   :  { %v502_v16 = vmul.f32 %v1846_v42, %v368_v14 }
 0x174   :  { %v503_v24 = vmul.f32 %v1850_v46, %v370_v18 }
 0x175   :  { %v563_v41 = vpack.c.bf16 %v502_v16, %v500_v19 }
 0x176   :  { %v373_v20 = vpop.f32.mrb[28].mxu0  ;;  %v564_v21 = vpack.c.bf16 %v503_v24, %v501_v17 }
 0x177   :  { %v374_v47 = vadd.f32 %v373_v20, %v1836_v37  ;;  %v375_v22 = vpop.f32.mrb[29].mxu0 }
 0x178   :  { %v376_v25 = vadd.f32 %v375_v22, %v1842_v38  ;;  %v377_v58 = vpop.f32.mrb[30].mxu0  ;;  %797 = vmatprep.mubr.bf16.mxu1 %v564_v21 }
 0x179   :  { %v378_v26 = vadd.f32 %v377_v58, %v1836_v37  ;;  %v379_v29 = vpop.f32.mrb[31].mxu0  ;;  %798 = vmatmul.mubr.bf16.gmra.mrb[24].mxu1 %v563_v41  ;;  %v504_v30 = vmul.f32 %v1846_v42, %v374_v47 }
 0x17a   :  { %v380_v59 = vadd.f32 %v379_v29, %v1842_v38  ;;  %v505_v35 = vmul.f32 %v1850_v46, %v376_v25 }
 0x17b   :  { %v506_v31 = vmul.f32 %v1846_v42, %v378_v26  ;;  %v1923_v42 = vrot.slane %v463_v27, %v1833_v36 }
 0x17c   :  { %v507_v23 = vmul.f32 %v1850_v46, %v380_v59 }
 0x17d   :  { %v565_v28 = vpack.c.bf16 %v506_v31, %v504_v30 }
 0x17e   :  { %v383_v32 = vpop.f32.mrb[32].mxu0  ;;  %v566_v34 = vpack.c.bf16 %v507_v23, %v505_v35 }
 0x17f   :  { %v384_v0 = vadd.f32 %v383_v32, %v1836_v37  ;;  %v385_v40 = vpop.f32.mrb[33].mxu0 }
 0x180   :  { %v386_v43 = vadd.f32 %v385_v40, %v1842_v38  ;;  %v387_v44 = vpop.f32.mrb[34].mxu0  ;;  %805 = vmatprep.mubr.bf16.mxu1 %v566_v34 }
 0x181   :  { %v388_v46 = vadd.f32 %v387_v44, %v1836_v37  ;;  %v389_v45 = vpop.f32.mrb[35].mxu0  ;;  %806 = vmatmul.mubr.bf16.gmra.mrb[28].mxu1 %v565_v28  ;;  %v519_v49 = vmul.f32 %v1919_v39, %v384_v0 }
 0x182   :  { %v390_v48 = vadd.f32 %v389_v45, %v1842_v38  ;;  %v520_v51 = vmul.f32 %v1923_v42, %v386_v43 }
 0x183   :  { %v521_v50 = vmul.f32 %v1919_v39, %v388_v46 }
 0x184   :  { %v522_v52 = vmul.f32 %v1923_v42, %v390_v48 }
 0x185   :  { %v567_v53 = vpack.c.bf16 %v521_v50, %v519_v49 }
 0x186   :  { %v393_v54 = vpop.f32.mrb[36].mxu0  ;;  %v568_v36 = vpack.c.bf16 %v522_v52, %v520_v51 }
 0x187   :  { %v394_v55 = vadd.f32 %v393_v54, %v1836_v37  ;;  %v395_v56 = vpop.f32.mrb[37].mxu0 }
 0x188   :  { %v396_v57 = vadd.f32 %v395_v56, %v1842_v38  ;;  %v397_v60 = vpop.f32.mrb[38].mxu0  ;;  %813 = vmatprep.mubr.bf16.mxu1 %v568_v36 }
 0x189   :  { %v398_v61 = vadd.f32 %v397_v60, %v1836_v37  ;;  %v399_v62 = vpop.f32.mrb[39].mxu0  ;;  %814 = vmatmul.mubr.bf16.gmra.mrb[32].mxu1 %v567_v53  ;;  %v523_v1 = vmul.f32 %v1919_v39, %v394_v55 }
 0x18a   :  { %v400_v63 = vadd.f32 %v399_v62, %v1842_v38  ;;  %v524_v3 = vmul.f32 %v1923_v42, %v396_v57 }
 0x18b   :  { %v525_v2 = vmul.f32 %v1919_v39, %v398_v61 }
 0x18c   :  { %v526_v4 = vmul.f32 %v1923_v42, %v400_v63 }
 0x18d   :  { %v569_v5 = vpack.c.bf16 %v525_v2, %v523_v1  ;;  %v1424_v2 = vld [vmem:[#allocation8 + $0x8] sm:$0xff]  }
 0x18e   :  { %v403_v6 = vpop.f32.mrb[40].mxu0  ;;  %v570_v7 = vpack.c.bf16 %v526_v4, %v524_v3  ;;  %1327 = vmatprep.subr.bf16.mxu0 %v1424_v2  ;;  %1358 = vmatprep.subr.bf16.mxu1 %v1424_v2 }
 0x18f   :  { %v404_v8 = vadd.f32 %v403_v6, %v1836_v37  ;;  %v405_v9 = vpop.f32.mrb[41].mxu0  ;;  %1328 = vmatpush3.bf16.msra.mxu0 %v1424_v2  ;;  %1366 = vmatpush3.bf16.msra.mxu1 %v1424_v2 }
 0x190   :  { %v406_v10 = vadd.f32 %v405_v9, %v1842_v38  ;;  %v407_v11 = vpop.f32.mrb[42].mxu0  ;;  %821 = vmatprep.mubr.bf16.mxu1 %v570_v7 }
 0x191   :  { %v408_v12 = vadd.f32 %v407_v11, %v1836_v37  ;;  %v409_v13 = vpop.f32.mrb[43].mxu0  ;;  %822 = vmatmul.mubr.bf16.gmra.mrb[36].mxu1 %v569_v5  ;;  %v527_v15 = vmul.f32 %v1919_v39, %v404_v8 }
 0x192   :  { %v410_v14 = vadd.f32 %v409_v13, %v1842_v38  ;;  %v528_v19 = vmul.f32 %v1923_v42, %v406_v10 }
 0x193   :  { %v529_v18 = vmul.f32 %v1919_v39, %v408_v12 }
 0x194   :  { %v530_v16 = vmul.f32 %v1923_v42, %v410_v14 }
 0x195   :  { %v571_v17 = vpack.c.bf16 %v529_v18, %v527_v15 }
 0x196   :  { %v413_v24 = vpop.f32.mrb[44].mxu0  ;;  %v572_v41 = vpack.c.bf16 %v530_v16, %v528_v19 }
 0x197   :  { %v414_v20 = vadd.f32 %v413_v24, %v1836_v37  ;;  %v415_v21 = vpop.f32.mrb[45].mxu0 }
 0x198   :  { %v416_v47 = vadd.f32 %v415_v21, %v1842_v38  ;;  %v417_v22 = vpop.f32.mrb[46].mxu0  ;;  %829 = vmatprep.mubr.bf16.mxu1 %v572_v41 }
 0x199   :  { %v418_v25 = vadd.f32 %v417_v22, %v1836_v37  ;;  %v419_v58 = vpop.f32.mrb[47].mxu0  ;;  %830 = vmatmul.mubr.bf16.gmra.mrb[40].mxu1 %v571_v17  ;;  %v531_v29 = vmul.f32 %v1919_v39, %v414_v20 }
 0x19a   :  { %v420_v26 = vadd.f32 %v419_v58, %v1842_v38  ;;  %v532_v30 = vmul.f32 %v1923_v42, %v416_v47 }
 0x19b   :  { %v533_v59 = vmul.f32 %v1919_v39, %v418_v25 }
 0x19c   :  { %v534_v31 = vmul.f32 %v1923_v42, %v420_v26 }
 0x19d   :  { %v573_v35 = vpack.c.bf16 %v533_v59, %v531_v29 }
 0x19e   :  { %v423_v23 = vpop.f32.mrb[48].mxu0  ;;  %v574_v27 = vpack.c.bf16 %v534_v31, %v532_v30  ;;  %v1425_v30 = vld [vmem:[#allocation8 + $0x10] sm:$0xff]  }
 0x19f   :  { %v424_v28 = vadd.f32 %v423_v23, %v1836_v37  ;;  %v425_v32 = vpop.f32.mrb[49].mxu0  ;;  %1329 = vmatprep.subr.bf16.mxu0 %v1425_v30  ;;  %1359 = vmatprep.subr.bf16.mxu1 %v1425_v30  ;;  %v1430_v23 = vld [vmem:[#allocation8 + $0x38] sm:$0xff]  }
 0x1a0   :  { %v426_v34 = vadd.f32 %v425_v32, %v1842_v38  ;;  %v427_v0 = vpop.f32.mrb[50].mxu0  ;;  %837 = vmatprep.mubr.bf16.mxu1 %v574_v27  ;;  %1330 = vmatpush3.bf16.msra.mxu0 %v1425_v30 }
 0x1a1   :  { %v428_v40 = vadd.f32 %v427_v0, %v1836_v37  ;;  %v429_v43 = vpop.f32.mrb[51].mxu0  ;;  %838 = vmatmul.mubr.bf16.gmra.mrb[44].mxu1 %v573_v35  ;;  %v535_v46 = vmul.f32 %v1919_v39, %v424_v28 }
 0x1a2   :  { %v430_v44 = vadd.f32 %v429_v43, %v1842_v38  ;;  %v536_v48 = vmul.f32 %v1923_v42, %v426_v34  ;;  %1367 = vmatpush3.bf16.msra.mxu1 %v1425_v30  ;;  %v2025_v30 = vld [vmem:[%s2127_s6 + $0x1] ss:$0 sm:$0xff] }
 0x1a3   :  { %v537_v45 = vmul.f32 %v1919_v39, %v428_v40 }
 0x1a4   :  { %v538_v49 = vmul.f32 %v1923_v42, %v430_v44 }
 0x1a5   :  { %v575_v50 = vpack.c.bf16 %v537_v45, %v535_v46 }
 0x1a6   :  { %v433_v51 = vpop.f32.mrb[52].mxu0  ;;  %v576_v52 = vpack.c.bf16 %v538_v49, %v536_v48 }
 0x1a7   :  { %v434_v53 = vadd.f32 %v433_v51, %v1836_v37  ;;  %v435_v54 = vpop.f32.mrb[53].mxu0 }
 0x1a8   :  { %v436_v36 = vadd.f32 %v435_v54, %v1842_v38  ;;  %v437_v55 = vpop.f32.mrb[54].mxu0  ;;  %845 = vmatprep.mubr.bf16.mxu1 %v576_v52 }
 0x1a9   :  { %v438_v56 = vadd.f32 %v437_v55, %v1836_v37  ;;  %v439_v57 = vpop.f32.mrb[55].mxu0  ;;  %846 = vmatmul.mubr.bf16.gmra.mrb[48].mxu1 %v575_v50  ;;  %v539_v61 = vmul.f32 %v1919_v39, %v434_v53 }
 0x1aa   :  { %v440_v60 = vadd.f32 %v439_v57, %v1842_v38  ;;  %v540_v63 = vmul.f32 %v1923_v42, %v436_v36 }
 0x1ab   :  { %v541_v62 = vmul.f32 %v1919_v39, %v438_v56 }
 0x1ac   :  { %v542_v1 = vmul.f32 %v1923_v42, %v440_v60 }
 0x1ad   :  { %v577_v3 = vpack.c.bf16 %v541_v62, %v539_v61 }
 0x1ae   :  { %v443_v4 = vpop.f32.mrb[56].mxu0  ;;  %v578_v5 = vpack.c.bf16 %v542_v1, %v540_v63 }
 0x1af   :  { %v444_v6 = vadd.f32 %v443_v4, %v1836_v37  ;;  %v445_v7 = vpop.f32.mrb[57].mxu0 }
 0x1b0   :  { %v446_v8 = vadd.f32 %v445_v7, %v1842_v38  ;;  %v447_v9 = vpop.f32.mrb[58].mxu0  ;;  %853 = vmatprep.mubr.bf16.mxu1 %v578_v5 }
 0x1b1   :  { %v448_v10 = vadd.f32 %v447_v9, %v1836_v37  ;;  %v449_v11 = vpop.f32.mrb[59].mxu0  ;;  %854 = vmatmul.mubr.bf16.gmra.mrb[52].mxu1 %v577_v3  ;;  %v543_v13 = vmul.f32 %v1919_v39, %v444_v6 }
 0x1b2   :  { %v450_v12 = vadd.f32 %v449_v11, %v1842_v38  ;;  %v544_v15 = vmul.f32 %v1923_v42, %v446_v8 }
 0x1b3   :  { %v545_v14 = vmul.f32 %v1919_v39, %v448_v10 }
 0x1b4   :  { %v546_v18 = vmul.f32 %v1923_v42, %v450_v12 }
 0x1b5   :  { %v579_v19 = vpack.c.bf16 %v545_v14, %v543_v13 }
 0x1b6   :  { %v453_v16 = vpop.f32.mrb[60].mxu0  ;;  %v580_v17 = vpack.c.bf16 %v546_v18, %v544_v15 }
 0x1b7   :  { %v454_v24 = vadd.f32 %v453_v16, %v1836_v37  ;;  %v455_v41 = vpop.f32.mrb[61].mxu0 }
 0x1b8   :  { %v456_v20 = vadd.f32 %v455_v41, %v1842_v38  ;;  %v457_v21 = vpop.f32.mrb[62].mxu0  ;;  %861 = vmatprep.mubr.bf16.mxu1 %v580_v17 }
 0x1b9   :  { %v458_v47 = vadd.f32 %v457_v21, %v1836_v37  ;;  %v459_v22 = vpop.f32.mrb[63].mxu0  ;;  %862 = vmatmul.mubr.bf16.gmra.mrb[56].mxu1 %v579_v19  ;;  %v547_v58 = vmul.f32 %v1919_v39, %v454_v24  ;;  %v1426_v37 = vld [vmem:[#allocation8 + $0x18] sm:$0xff]  }
 0x1ba   :  { %v460_v25 = vadd.f32 %v459_v22, %v1842_v38  ;;  %v548_v29 = vmul.f32 %v1923_v42, %v456_v20  ;;  %1331 = vmatprep.subr.bf16.mxu0 %v1426_v37  ;;  %1360 = vmatprep.subr.bf16.mxu1 %v1426_v37  ;;  %v1427_v38 = vld [vmem:[#allocation8 + $0x20] sm:$0xff]  }
 0x1bb   :  { %v549_v26 = vmul.f32 %v1919_v39, %v458_v47  ;;  %1332 = vmatpush3.bf16.msra.mxu0 %v1426_v37  ;;  %1368 = vmatpush3.bf16.msra.mxu1 %v1426_v37  ;;  %v1428_v39 = vld [vmem:[#allocation8 + $0x28] sm:$0xff]   ;;  %v2014_v47 = vld [vmem:[%s2125_s4 + $0x4] ss:$0 sm:$0xff] }
 0x1bc   :  { %v550_v59 = vmul.f32 %v1923_v42, %v460_v25  ;;  %1333 = vmatprep.subr.bf16.mxu0 %v1427_v38  ;;  %1361 = vmatprep.subr.bf16.mxu1 %v1427_v38  ;;  %v1429_v42 = vld [vmem:[#allocation8 + $0x30] sm:$0xff]  }
 0x1bd   :  { %v581_v31 = vpack.c.bf16 %v549_v26, %v547_v58 }
 0x1be   :  { %v582_v35 = vpack.c.bf16 %v550_v59, %v548_v29  ;;  %v2020_v59 = vld [vmem:[%s2127_s6] ss:$0 sm:$0xff] }
 0x1bf   :  { %1334 = vmatpush3.bf16.msra.mxu0 %v1427_v38  ;;  %1369 = vmatpush3.bf16.msra.mxu1 %v1427_v38 }
 0x1c0   :  { %869 = vmatprep.mubr.bf16.mxu1 %v582_v35  ;;  %1335 = vmatprep.subr.bf16.mxu0 %v1428_v39 }
 0x1c1   :  { %870 = vmatmul.mubr.bf16.gmra.mrb[60].mxu1 %v581_v31  ;;  %1362 = vmatprep.subr.bf16.mxu1 %v1428_v39 }
 0x1c3   :  { %1336 = vmatpush3.bf16.msra.mxu0 %v1428_v39  ;;  %1370 = vmatpush3.bf16.msra.mxu1 %v1428_v39 }
 0x1c4   :  { %1337 = vmatprep.subr.bf16.mxu0 %v1429_v42  ;;  %1363 = vmatprep.subr.bf16.mxu1 %v1429_v42 }
 0x1c7   :  { %1338 = vmatpush3.bf16.msra.mxu0 %v1429_v42  ;;  %1371 = vmatpush3.bf16.msra.mxu1 %v1429_v42 }
 0x1c8   :  { %1339 = vmatprep.subr.bf16.mxu0 %v1430_v23  ;;  %1364 = vmatprep.subr.bf16.mxu1 %v1430_v23 }
 0x1cb   :  { %1340 = vmatpush3.bf16.msra.mxu0 %v1430_v23  ;;  %1372 = vmatpush3.bf16.msra.mxu1 %v1430_v23 }
 0x21c   :  { %v1213_v27 = vpop.f32.mrb[0].mxu1 }
 0x21d   :  { %v1214_v28 = vpop.f32.mrb[1].mxu1 }
 0x21e   :  { %v1215_v32 = vadd.f32 %v1214_v28, %v1213_v27  ;;  %v1216_v34 = vpop.f32.mrb[2].mxu1 }
 0x21f   :  { %v1217_v0 = vpop.f32.mrb[3].mxu1 }
 0x220   :  { %v1218_v40 = vadd.f32 %v1217_v0, %v1216_v34  ;;  %v752_v58 = vadd.f32 %v1215_v32, %v2014_v47 }
 0x222   :  { %v755_v35 = vadd.f32 %v1218_v40, %v2014_v47  ;;  %v887_v39 = vmul.f32 %v2020_v59, %v752_v58 }
 0x224   :  { %v1219_v43 = vpop.f32.mrb[4].mxu1  ;;  %v888_v27 = vmul.f32 %v2020_v59, %v755_v35 }
 0x225   :  { %v1220_v44 = vpop.f32.mrb[5].mxu1 }
 0x226   :  { %v1221_v46 = vadd.f32 %v1220_v44, %v1219_v43  ;;  %v1222_v45 = vpop.f32.mrb[6].mxu1 }
 0x227   :  { %v1223_v48 = vpop.f32.mrb[7].mxu1 }
 0x228   :  { %v1224_v49 = vadd.f32 %v1223_v48, %v1222_v45  ;;  %v760_v43 = vadd.f32 %v1221_v46, %v2014_v47 }
 0x22c   :  { %v1225_v50 = vpop.f32.mrb[8].mxu1 }
 0x22d   :  { %v1226_v51 = vpop.f32.mrb[9].mxu1 }
 0x22e   :  { %v1987_v52 = vadd.f32 %v1226_v51, %v1225_v50  ;;  %v1228_v53 = vpop.f32.mrb[10].mxu1  ;;  %v763_v50 = vadd.f32 %v1224_v49, %v2014_v47 }
 0x22f   :  { %v1229_v54 = vpop.f32.mrb[11].mxu1 }
 0x230   :  { %v1989_v36 = vadd.f32 %v1229_v54, %v1228_v53  ;;  %v768_v49 = vadd.f32 %v1987_v52, %v2014_v47 }
 0x234   :  { %v1231_v55 = vpop.f32.mrb[12].mxu1 }
 0x235   :  { %v1232_v56 = vpop.f32.mrb[13].mxu1 }
 0x236   :  { %v1991_v57 = vadd.f32 %v1232_v56, %v1231_v55  ;;  %v1234_v60 = vpop.f32.mrb[14].mxu1  ;;  %v889_v55 = vmul.f32 %v2020_v59, %v760_v43 }
 0x237   :  { %v1235_v61 = vpop.f32.mrb[15].mxu1 }
 0x238   :  { %v1993_v62 = vadd.f32 %v1235_v61, %v1234_v60  ;;  %v890_v61 = vmul.f32 %v2020_v59, %v763_v50 }
 0x23a   :  { %v779_v35 = vadd.f32 %v1993_v62, %v2014_v47 }
 0x23c   :  { %v1237_v63 = vpop.f32.mrb[16].mxu1 }
 0x23d   :  { %v1238_v1 = vpop.f32.mrb[17].mxu1 }
 0x23e   :  { %v1995_v2 = vadd.f32 %v1238_v1, %v1237_v63  ;;  %v1240_v3 = vpop.f32.mrb[18].mxu1 }
 0x23f   :  { %v1241_v4 = vpop.f32.mrb[19].mxu1 }
 0x240   :  { %v1997_v5 = vadd.f32 %v1241_v4, %v1240_v3  ;;  %v784_v62 = vadd.f32 %v1995_v2, %v2014_v47 }
 0x244   :  { %v1243_v6 = vpop.f32.mrb[20].mxu1 }
 0x245   :  { %v1244_v7 = vpop.f32.mrb[21].mxu1 }
 0x246   :  { %v1999_v8 = vadd.f32 %v1244_v7, %v1243_v6  ;;  %v1246_v9 = vpop.f32.mrb[22].mxu1 }
 0x247   :  { %v1247_v10 = vpop.f32.mrb[23].mxu1 }
 0x248   :  { %v2001_v11 = vadd.f32 %v1247_v10, %v1246_v9  ;;  %v771_v10 = vadd.f32 %v1989_v36, %v2014_v47  ;;  %v776_v36 = vadd.f32 %v1991_v57, %v2014_v47  ;;  %v894_v57 = vmul.f32 %v2020_v59, %v779_v35 }
 0x24a   :  { %v892_v52 = vmul.f32 %v2020_v59, %v771_v10 }
 0x24c   :  { %v1249_v12 = vpop.f32.mrb[24].mxu1 }
 0x24d   :  { %v1250_v13 = vpop.f32.mrb[25].mxu1 }
 0x24e   :  { %v2003_v14 = vadd.f32 %v1250_v13, %v1249_v12  ;;  %v1252_v15 = vpop.f32.mrb[26].mxu1 }
 0x24f   :  { %v1253_v18 = vpop.f32.mrb[27].mxu1 }
 0x250   :  { %v2005_v19 = vadd.f32 %v1253_v18, %v1252_v15  ;;  %v891_v18 = vmul.f32 %v2020_v59, %v768_v49 }
 0x254   :  { %v1255_v16 = vpop.f32.mrb[28].mxu1 }
 0x255   :  { %v1256_v17 = vpop.f32.mrb[29].mxu1 }
 0x256   :  { %v2007_v24 = vadd.f32 %v1256_v17, %v1255_v16  ;;  %v1258_v41 = vpop.f32.mrb[30].mxu1 }
 0x257   :  { %v1259_v20 = vpop.f32.mrb[31].mxu1 }
 0x258   :  { %v2009_v21 = vadd.f32 %v1259_v20, %v1258_v41 }
 0x25c   :  { %v1261_v22 = vpop.f32.mrb[32].mxu1 }
 0x25d   :  { %v1262_v25 = vpop.f32.mrb[33].mxu1 }
 0x25e   :  { %v1263_v26 = vadd.f32 %v1262_v25, %v1261_v22  ;;  %v1264_v29 = vpop.f32.mrb[34].mxu1 }
 0x25f   :  { %v1265_v31 = vpop.f32.mrb[35].mxu1 }
 0x260   :  { %v816_v37 = vadd.f32 %v1263_v26, %v2014_v47  ;;  %v1266_v38 = vadd.f32 %v1265_v31, %v1264_v29 }
 0x262   :  { %v909_v42 = vmul.f32 %v2025_v30, %v816_v37  ;;  %v819_v23 = vadd.f32 %v1266_v38, %v2014_v47 }
 0x264   :  { %v910_v28 = vmul.f32 %v2025_v30, %v819_v23  ;;  %v1267_v32 = vpop.f32.mrb[36].mxu1  ;;  %v925_v34 = vadd.f32 %v909_v42, %v887_v39  ;;  %v893_v42 = vmul.f32 %v2020_v59, %v776_v36  ;;  %v803_v36 = vadd.f32 %v2005_v19, %v2014_v47 }
 0x265   :  { %v1268_v0 = vpop.f32.mrb[37].mxu1  ;;  %v808_v19 = vadd.f32 %v2007_v24, %v2014_v47 }
 0x266   :  { %v1269_v44 = vadd.f32 %v1268_v0, %v1267_v32  ;;  %v1270_v40 = vpop.f32.mrb[38].mxu1  ;;  %v926_v45 = vadd.f32 %v910_v28, %v888_v27 }
 0x267   :  { %v1271_v48 = vpop.f32.mrb[39].mxu1 }
 0x268   :  { %v824_v51 = vadd.f32 %v1269_v44, %v2014_v47  ;;  %v1272_v53 = vadd.f32 %v1271_v48, %v1270_v40  ;;  %v941_v54 = vpack.c.bf16 %v926_v45, %v925_v34  ;;  %v787_v48 = vadd.f32 %v1997_v5, %v2014_v47 }
 0x269   :  { %v792_v5 = vadd.f32 %v1999_v8, %v2014_v47 }
 0x26a   :  { %v911_v56 = vmul.f32 %v2025_v30, %v824_v51  ;;  %v827_v60 = vadd.f32 %v1272_v53, %v2014_v47  ;;  %1341 = vmatprep.mubr.bf16.mxu0 %v941_v54  ;;  %v895_v54 = vmul.f32 %v2020_v59, %v784_v62  ;;  %v896_v2 = vmul.f32 %v2020_v59, %v787_v48 }
 0x26c   :  { %v927_v46 = vadd.f32 %v911_v56, %v889_v55  ;;  %v912_v63 = vmul.f32 %v2025_v30, %v827_v60  ;;  %v1273_v1 = vpop.f32.mrb[40].mxu1 }
 0x26d   :  { %v1274_v3 = vpop.f32.mrb[41].mxu1 }
 0x26e   :  { %v928_v4 = vadd.f32 %v912_v63, %v890_v61  ;;  %v1275_v6 = vadd.f32 %v1274_v3, %v1273_v1  ;;  %v1276_v7 = vpop.f32.mrb[42].mxu1 }
 0x26f   :  { %v1277_v9 = vpop.f32.mrb[43].mxu1 }
 0x270   :  { %v942_v12 = vpack.c.bf16 %v928_v4, %v927_v46  ;;  %v832_v13 = vadd.f32 %v1275_v6, %v2014_v47  ;;  %v1278_v15 = vadd.f32 %v1277_v9, %v1276_v7  ;;  %v795_v6 = vadd.f32 %v2001_v11, %v2014_v47 }
 0x271   :  { %v800_v11 = vadd.f32 %v2003_v14, %v2014_v47  ;;  %v900_v14 = vmul.f32 %v2020_v59, %v803_v36 }
 0x272   :  { %v913_v16 = vmul.f32 %v2025_v30, %v832_v13  ;;  %v835_v17 = vadd.f32 %v1278_v15, %v2014_v47  ;;  %1342 = vmatmul.mubr.bf16.vlgmr.msra.gmra.mrb[64].mxu0 %v942_v12  ;;  %v897_v12 = vmul.f32 %v2020_v59, %v792_v5  ;;  %v898_v8 = vmul.f32 %v2020_v59, %v795_v6 }
 0x274   :  { %v914_v41 = vmul.f32 %v2025_v30, %v835_v17  ;;  %v1279_v20 = vpop.f32.mrb[44].mxu1  ;;  %v929_v22 = vadd.f32 %v913_v16, %v891_v18 }
 0x275   :  { %v1280_v25 = vpop.f32.mrb[45].mxu1 }
 0x276   :  { %v1281_v58 = vadd.f32 %v1280_v25, %v1279_v20  ;;  %v1282_v26 = vpop.f32.mrb[46].mxu1  ;;  %v930_v29 = vadd.f32 %v914_v41, %v892_v52 }
 0x277   :  { %v1283_v31 = vpop.f32.mrb[47].mxu1 }
 0x278   :  { %v840_v37 = vadd.f32 %v1281_v58, %v2014_v47  ;;  %v1284_v38 = vadd.f32 %v1283_v31, %v1282_v26  ;;  %v943_v39 = vpack.c.bf16 %v930_v29, %v929_v22  ;;  %v899_v31 = vmul.f32 %v2020_v59, %v800_v11 }
 0x27a   :  { %v915_v23 = vmul.f32 %v2025_v30, %v840_v37  ;;  %v843_v27 = vadd.f32 %v1284_v38, %v2014_v47  ;;  %1345 = vmatprep.mubr.bf16.mxu0 %v943_v39 }
 0x27c   :  { %v916_v28 = vmul.f32 %v2025_v30, %v843_v27  ;;  %v1285_v32 = vpop.f32.mrb[48].mxu1  ;;  %v931_v34 = vadd.f32 %v915_v23, %v893_v42 }
 0x27d   :  { %v1286_v0 = vpop.f32.mrb[49].mxu1 }
 0x27e   :  { %v1287_v43 = vadd.f32 %v1286_v0, %v1285_v32  ;;  %v1288_v44 = vpop.f32.mrb[50].mxu1  ;;  %v932_v40 = vadd.f32 %v916_v28, %v894_v57 }
 0x27f   :  { %v1289_v45 = vpop.f32.mrb[51].mxu1 }
 0x280   :  { %v848_v50 = vadd.f32 %v1287_v43, %v2014_v47  ;;  %v1290_v51 = vadd.f32 %v1289_v45, %v1288_v44  ;;  %v944_v53 = vpack.c.bf16 %v932_v40, %v931_v34  ;;  %v811_v34 = vadd.f32 %v2009_v21, %v2014_v47  ;;  %v880_v21 = vld [vmem:[%s2127_s6 + $0x2] sm:$0x1]  ;;  %s1558_s6 = smov [#allocation10]  }
 0x281   :  { %v901_v44 = vmul.f32 %v2020_v59, %v808_v19  ;;  %s1138_s21 = sshll.u32 %s1558_s6, 4  ;;  %s1139_s21 = int_to_ptr.vmem [resolvable:$true] %s1138_s21 }
 0x282   :  { %v917_v55 = vmul.f32 %v2025_v30, %v848_v50  ;;  %v851_v56 = vadd.f32 %v1290_v51, %v2014_v47  ;;  %1346 = vmatmul.mubr.bf16.gmra.mrb[68].mxu0 %v944_v53  ;;  %v902_v24 = vmul.f32 %v2020_v59, %v811_v34  ;;  %s1519_s22 = scalar_lea.vmem %s1139_s21, 2048  ;;  %p1524_p5 = scmp.lt.s32.totalorder %s1139_s21, %s1139_s21 }
 0x283   :  { %p1520_p4 = scmp.ne.s32.totalorder %s1139_s21, %s1519_s22  ;;  %p1525_p6 = scmp.lt.s32.totalorder %s1519_s22, %s1519_s22 }
 0x284   :  { %v918_v60 = vmul.f32 %v2025_v30, %v851_v56  ;;  %v1291_v61 = vpop.f32.mrb[52].mxu1  ;;  %v933_v46 = vadd.f32 %v917_v55, %v895_v54  ;;  %v965_v54 = vmul.f32 2.0, %v880_v21 }
 0x285   :  { %v1292_v63 = vpop.f32.mrb[53].mxu1  ;;  %p1526_p7 = por %p1525_p6, %p1524_p5 }
 0x286   :  { %v1293_v1 = vadd.f32 %v1292_v63, %v1291_v61  ;;  %v1294_v3 = vpop.f32.mrb[54].mxu1  ;;  %v934_v49 = vadd.f32 %v918_v60, %v896_v2  ;;  %v970_v55 = vrot.slane %v965_v54, %v1828_v33 }
 0x287   :  { %v1295_v4 = vpop.f32.mrb[55].mxu1  ;;  %p1527_p8 = pnand %p1526_p7, %p1520_p4 }
 0x288   :  { %v856_v7 = vadd.f32 %v1293_v1, %v2014_v47  ;;  %v1296_v9 = vadd.f32 %v1295_v4, %v1294_v3  ;;  %v945_v10 = vpack.c.bf16 %v934_v49, %v933_v46 }
 0x28a   :  { %v919_v13 = vmul.f32 %v2025_v30, %v856_v7  ;;  %v859_v15 = vadd.f32 %v1296_v9, %v2014_v47  ;;  %1349 = vmatprep.mubr.bf16.mxu1 %v945_v10 }
 0x28c   :  { %v935_v18 = vadd.f32 %v919_v13, %v897_v12  ;;  %v920_v16 = vmul.f32 %v2025_v30, %v859_v15  ;;  %v1297_v17 = vpop.f32.mrb[56].mxu1 }
 0x28d   :  { %v1298_v52 = vpop.f32.mrb[57].mxu1 }
 0x28e   :  { %v936_v41 = vadd.f32 %v920_v16, %v898_v8  ;;  %v1299_v20 = vadd.f32 %v1298_v52, %v1297_v17  ;;  %v1300_v22 = vpop.f32.mrb[58].mxu1 }
 0x28f   :  { %v1301_v25 = vpop.f32.mrb[59].mxu1 }
 0x290   :  { %v946_v58 = vpack.c.bf16 %v936_v41, %v935_v18  ;;  %v864_v26 = vadd.f32 %v1299_v20, %v2014_v47  ;;  %v1302_v29 = vadd.f32 %v1301_v25, %v1300_v22 }
 0x292   :  { %v921_v35 = vmul.f32 %v2025_v30, %v864_v26  ;;  %v867_v37 = vadd.f32 %v1302_v29, %v2014_v47  ;;  %1350 = vmatmul.mubr.bf16.vlgmr.msra.gmra.mrb[64].mxu1 %v946_v58 }
 0x294   :  { %v922_v38 = vmul.f32 %v2025_v30, %v867_v37  ;;  %v1303_v39 = vpop.f32.mrb[60].mxu1  ;;  %v937_v42 = vadd.f32 %v921_v35, %v899_v31 }
 0x295   :  { %v1304_v23 = vpop.f32.mrb[61].mxu1 }
 0x296   :  { %v1305_v27 = vadd.f32 %v1304_v23, %v1303_v39  ;;  %v1306_v57 = vpop.f32.mrb[62].mxu1  ;;  %v938_v28 = vadd.f32 %v922_v38, %v900_v14 }
 0x297   :  { %v1307_v32 = vpop.f32.mrb[63].mxu1 }
 0x298   :  { %v872_v0 = vadd.f32 %v1305_v27, %v2014_v47  ;;  %v1308_v62 = vadd.f32 %v1307_v32, %v1306_v57  ;;  %v947_v43 = vpack.c.bf16 %v938_v28, %v937_v42 }
 0x29a   :  { %v923_v40 = vmul.f32 %v2025_v30, %v872_v0  ;;  %v875_v45 = vadd.f32 %v1308_v62, %v2014_v47  ;;  %1353 = vmatprep.mubr.bf16.mxu1 %v947_v43 }
 0x29c   :  { %v924_v48 = vmul.f32 %v2025_v30, %v875_v45  ;;  %v939_v50 = vadd.f32 %v923_v40, %v901_v44 }
 0x29e   :  { %v940_v51 = vadd.f32 %v924_v48, %v902_v24 }
 0x2a0   :  { %v948_v53 = vpack.c.bf16 %v940_v51, %v939_v50 }
 0x2a2   :  { %1354 = vmatmul.mubr.bf16.gmra.mrb[68].mxu1 %v948_v53 }
 0x345   :  { %v1343_v56 = vpop.f32.mrb[64].mxu0 }
 0x346   :  { %v1063_v2 = vadd.f32 %v1343_v56, %v970_v55  ;;  %v1054_v60 = vpop.f32.mrb[65].mxu0 }
 0x347   :  { %v1055_v47 = vadd.f32 %v1054_v60, %v970_v55  ;;  %v1344_v61 = vpop.f32.mrb[66].mxu0 }
 0x348   :  { %1119 = vst [vmem:[#allocation10 + $0x10] sm:$0xff] %v1063_v2  ;;  %v1066_v59 = vadd.f32 %v1344_v61, %v970_v55  ;;  %v1057_v46 = vpop.f32.mrb[67].mxu0 }
 0x349   :  { %1117 = vst [vmem:[#allocation10] sm:$0xff] %v1055_v47  ;;  %v1058_v30 = vadd.f32 %v1057_v46, %v970_v55 }
 0x34a   :  { %1120 = vst [vmem:[#allocation10 + $0x18] sm:$0xff] %v1066_v59 }
 0x34b   :  { %1118 = vst [vmem:[#allocation10 + $0x8] sm:$0xff] %v1058_v30 }
 0x355   :  { %v1347_v63 = vpop.f32.mrb[68].mxu0 }
 0x356   :  { %v1079_v5 = vadd.f32 %v1347_v63, %v970_v55  ;;  %v1070_v1 = vpop.f32.mrb[69].mxu0 }
 0x357   :  { %v1071_v3 = vadd.f32 %v1070_v1, %v970_v55  ;;  %v1348_v49 = vpop.f32.mrb[70].mxu0 }
 0x358   :  { %1123 = vst [vmem:[#allocation10 + $0x30] sm:$0xff] %v1079_v5  ;;  %v1082_v4 = vadd.f32 %v1348_v49, %v970_v55  ;;  %v1073_v33 = vpop.f32.mrb[71].mxu0 }
 0x359   :  { %1121 = vst [vmem:[#allocation10 + $0x20] sm:$0xff] %v1071_v3  ;;  %v1074_v6 = vadd.f32 %v1073_v33, %v970_v55 }
 0x35a   :  { %1124 = vst [vmem:[#allocation10 + $0x38] sm:$0xff] %v1082_v4 }
 0x35b   :  { %1122 = vst [vmem:[#allocation10 + $0x28] sm:$0xff] %v1074_v6 }
 0x365   :  { %v1351_v7 = vpop.f32.mrb[64].mxu1 }
 0x366   :  { %v1095_v9 = vadd.f32 %v1351_v7, %v970_v55  ;;  %v1086_v10 = vpop.f32.mrb[65].mxu1 }
 0x367   :  { %v1087_v12 = vadd.f32 %v1086_v10, %v970_v55  ;;  %v1352_v13 = vpop.f32.mrb[66].mxu1 }
 0x368   :  { %1127 = vst [vmem:[#allocation10 + $0x50] sm:$0xff] %v1095_v9  ;;  %v1098_v15 = vadd.f32 %v1352_v13, %v970_v55  ;;  %v1089_v8 = vpop.f32.mrb[67].mxu1 }
 0x369   :  { %1125 = vst [vmem:[#allocation10 + $0x40] sm:$0xff] %v1087_v12  ;;  %v1090_v18 = vadd.f32 %v1089_v8, %v970_v55 }
 0x36a   :  { %1128 = vst [vmem:[#allocation10 + $0x58] sm:$0xff] %v1098_v15 }
 0x36b   :  { %1126 = vst [vmem:[#allocation10 + $0x48] sm:$0xff] %v1090_v18 }
 0x375   :  { %v1355_v16 = vpop.f32.mrb[68].mxu1 }
 0x376   :  { %v1111_v17 = vadd.f32 %v1355_v16, %v970_v55  ;;  %v1102_v52 = vpop.f32.mrb[69].mxu1 }
 0x377   :  { %v1103_v11 = vadd.f32 %v1102_v52, %v970_v55  ;;  %v1356_v41 = vpop.f32.mrb[70].mxu1 }
 0x378   :  { %1131 = vst [vmem:[#allocation10 + $0x70] sm:$0xff] %v1111_v17  ;;  %v1114_v20 = vadd.f32 %v1356_v41, %v970_v55  ;;  %v1105_v22 = vpop.f32.mrb[71].mxu1 }
 0x379   :  { %1129 = vst [vmem:[#allocation10 + $0x60] sm:$0xff] %v1103_v11  ;;  %v1106_v25 = vadd.f32 %v1105_v22, %v970_v55 }
 0x37a   :  { %1132 = vst [vmem:[#allocation10 + $0x78] sm:$0xff] %v1114_v20 }
 0x37b   :  { %1130 = vst [vmem:[#allocation10 + $0x68] sm:$0xff] %v1106_v25 }
 0x37c   :  { %1530 = shalt.err (!%p1527_p8)
}
 0x37d   :  { %s1531_s1 = scalar_lea.hbm %s2128_s7, 2048 }
 0x37e   :  { %p1532_p9 = scmp.ne.s32.totalorder %s2128_s7, %s1531_s1  ;;  %p1535_p10 = scmp.lt.u32.totalorder %s1531_s1, %s2128_s7 }
 0x380   :  { %p1537_p11 = pnand %p1535_p10, %p1532_p9 }
 0x382   :  { %1540 = shalt.err (!%p1537_p11)
}
 0x383   :  { %1144 = dma.vmem_to_hbm [thread:$0]  %s1139_s21, 2048, %s2128_s7, [#allocation4], %s1551_s13, %s1551_s13, %s1552_s14  }
 0x384   :  { %1547 = dma.done.wait [#allocation4], 2048  }
 0x385   :  { %1548 = vsyncadd [#allocation4], 4294965248 }
 0x386   :  { %1148 = vsyncpa [#allocation3], 1 }
 0x387   :  { %1149 = vsyncpa [#allocation6], 1 }
 0x388   :  { %1150 = vsyncpa [#allocation9], 1 }
 0x389   :  { %1151 = vsyncpa [#allocation4], 1 }

</bundles_post_ra>
